<compile_context>
chip_gen: v6e
topology: v6e:2x2x1
jax: 0.10.0
libtpu: 0.0.40
codegen_flags: <defaults>
</compile_context>

<pallas_src>
import functools

import jax
import jax.numpy as jnp
from jax.experimental import pallas as pl
from jax.experimental.pallas import tpu as pltpu


def _dice_stats_kernel(x_ref, t_ref, out_ref, inter_acc, union_acc, *,
                       rows, hw, cps, n_chunks, needs_mask, compute_dtype):
    """Accumulate per-class intersection / union partial sums.

    x_ref:   (1, C, rows, 128) logits, HBM dtype (f32 / bf16)
    t_ref:   (1, 1, rows, 128) int8 / int32 class ids
    out_ref: (1, 1, 2, C, 128) f32 lane-partials: [inter, union]
    inter_acc / union_acc: (C, 128) f32 scratch accumulators
    """
    c_idx = pl.program_id(2)                     # chunk index within the split
    C = x_ref.shape[1]

    @pl.when(c_idx == 0)
    def _():
        inter_acc[...] = jnp.zeros_like(inter_acc)
        union_acc[...] = jnp.zeros_like(union_acc)

    # ---- channel softmax over C dense (rows, 128) slabs --------------------
    # Unrolled over classes: every op is a full-tile VPU/EUP op (full sublane
    # utilization even for tiny C) and the channel max / sum never touch the
    # XLU.  bf16 inputs keep max/sub/exp in bf16 on chips with bf16 VPU/EUP;
    # everything from the channel sum onwards is f32.
    xs = [x_ref[0, c].astype(compute_dtype) for c in range(C)]
    m = xs[0]
    for c in range(1, C):
        m = jnp.maximum(m, xs[c])
    es = [jnp.exp(v - m).astype(jnp.float32) for v in xs]
    s = es[0]
    for c in range(1, C):
        s = s + es[c]
    inv = pl.reciprocal(s, approx=True)          # EUP slot, ~free
    ps = [e * inv for e in es]                   # per-class probabilities, f32

    t32 = t_ref[0, 0].astype(jnp.int32)          # (rows, 128) labels

    def accumulate(valid):
        # valid: None (full chunk) or (rows, 128) bool mask of in-range pixels.
        for c in range(C):
            hit_c = t32 == c
            p_c = ps[c]
            if valid is not None:
                hit_c = jnp.logical_and(hit_c, valid)
                p_c = jnp.where(valid, p_c, 0.0)          # NaN-safe select
            # intersection: sum_pixels p[target]  (select, no one-hot multiply)
            inter_acc[c, :] += jnp.sum(jnp.where(hit_c, p_c, 0.0), axis=0)
            # union: sum_pixels p  +  per-class pixel count
            union_acc[c, :] += (jnp.sum(p_c, axis=0)
                                + jnp.sum(hit_c.astype(jnp.float32), axis=0))

    if not needs_mask:
        accumulate(None)
    else:
        g = pl.program_id(1) * cps + c_idx        # global chunk index

        def masked():
            row = jax.lax.broadcasted_iota(jnp.int32, (rows, 128), 0)
            lane = jax.lax.broadcasted_iota(jnp.int32, (rows, 128), 1)
            pix = (g * rows + row) * 128 + lane
            accumulate(pix < hw)

        if n_chunks == 1:
            masked()
        else:
            # Only the globally-last chunk pays the tail-mask math.
            @pl.when(g != n_chunks - 1)
            def _():
                accumulate(None)

            @pl.when(g == n_chunks - 1)
            def _():
                masked()

    # Emit lane-dense per-(batch, split) partials once the sweep is done.
    @pl.when(c_idx == cps - 1)
    def _():
        out_ref[0, 0, 0] = inter_acc[...]
        out_ref[0, 0, 1] = union_acc[...]


def _default_compute_dtype(x_dtype):
    """bf16 softmax math only for bf16 inputs on chips with a bf16 VPU/EUP
    (v6e / v7x); f32 otherwise (v5e and older have no bf16 VPU/EUP)."""
    if x_dtype != jnp.bfloat16:
        return jnp.float32
    try:
        kind = jax.devices()[0].device_kind.lower()
    except Exception:
        return jnp.float32
    if any(tag in kind for tag in ("v2", "v3", "v4", "v5")):
        return jnp.float32
    return jnp.bfloat16


def _pick_rows(n_rows, n_classes, x_itemsize, t_itemsize,
               vmem_budget_bytes=12 * 1024 * 1024, max_rows=512):
    """Largest 32-aligned row chunk whose double-buffered input blocks fit the
    VMEM budget; prefers a chunk that divides the row count exactly so only
    genuinely-padded tails ever pay mask math."""
    bytes_per_row = 128 * 2 * (n_classes * x_itemsize + t_itemsize)
    cap = min(max(32, vmem_budget_bytes // bytes_per_row), max_rows)
    if n_rows <= cap:
        return n_rows                      # single / full-extent chunk
    for s in range(cap - cap % 32, 31, -32):
        if n_rows % s == 0:
            return s
    return max(32, cap - cap % 32)


def dice_loss(inputs: jax.Array, targets: jax.Array, smooth: float = 1e-6, *,
              rows_per_chunk: int | None = None, compute_dtype=None) -> jax.Array:
    """inputs: [B, C, H, W] float logits; targets: [B, H, W] (or [B, 1, H, W])
    integer class ids.  Supply int8 targets when C <= 127 to cut target HBM
    traffic 4x."""
    if targets.ndim == 4 and targets.shape[1] == 1:
        targets = targets[:, 0]
    B, C, H, W = inputs.shape
    HW = H * W
    R = pl.cdiv(HW, 128)                    # spatial rows after lane packing

    x = inputs.reshape(B, C, HW)            # logits stay in their HBM dtype
    t = targets.reshape(B, HW)
    if t.dtype not in (jnp.int8, jnp.int32):
        t = t.astype(jnp.int32)

    pad = R * 128 - HW
    if pad:                                  # only when HW is not a 128-multiple
        x = jnp.pad(x, ((0, 0), (0, 0), (0, pad)))
        t = jnp.pad(t, ((0, 0), (0, pad)))
    x4 = x.reshape(B, C, R, 128)             # free reshape -> lane-dense layout
    t4 = t.reshape(B, 1, R, 128)

    if compute_dtype is None:
        compute_dtype = _default_compute_dtype(x4.dtype)

    rows = rows_per_chunk if rows_per_chunk is not None else _pick_rows(
        R, C, x4.dtype.itemsize, t4.dtype.itemsize)
    rows = min(rows, R)
    n_chunks = pl.cdiv(R, rows)
    # Second "parallel" axis so v7x's two TensorCores both get work when B==1.
    n_split = 2 if (n_chunks >= 2 and n_chunks % 2 == 0) else 1
    cps = n_chunks // n_split
    needs_mask = (n_chunks * rows * 128) != HW

    kernel = functools.partial(
        _dice_stats_kernel, rows=rows, hw=HW, cps=cps, n_chunks=n_chunks,
        needs_mask=needs_mask, compute_dtype=compute_dtype)

    stats = pl.pallas_call(
        kernel,
        out_shape=jax.ShapeDtypeStruct((B, n_split, 2, C, 128), jnp.float32),
        grid_spec=pltpu.PrefetchScalarGridSpec(
            num_scalar_prefetch=0,
            grid=(B, n_split, cps),
            in_specs=[
                pl.BlockSpec((1, C, rows, 128),
                             lambda b, sp, c: (b, 0, sp * cps + c, 0)),
                pl.BlockSpec((1, 1, rows, 128),
                             lambda b, sp, c: (b, 0, sp * cps + c, 0)),
            ],
            out_specs=pl.BlockSpec((1, 1, 2, C, 128),
                                   lambda b, sp, c: (b, sp, 0, 0, 0)),
            scratch_shapes=[pltpu.VMEM((C, 128), jnp.float32),
                            pltpu.VMEM((C, 128), jnp.float32)],
        ),
        compiler_params=pltpu.CompilerParams(
            dimension_semantics=("parallel", "parallel", "arbitrary"),
            vmem_limit_bytes=24 * 1024 * 1024),
    )(x4, t4)

    # Finalize outside the kernel: fold split partials + lanes, then the tiny
    # dice ratio / mean.
    stats = stats.sum(axis=(1, 4))           # (B, 2, C)
    inter, union = stats[:, 0], stats[:, 1]
    dice = (2.0 * inter + smooth) / (union + smooth)
    return 1.0 - jnp.mean(dice)


def _dice_loss_ref(inputs, targets, smooth=1e-6):
    """Pure-JAX reference mirroring the PyTorch module."""
    p = jax.nn.softmax(inputs.astype(jnp.float32), axis=1)
    C = inputs.shape[1]
    oh = jax.nn.one_hot(targets, C, dtype=jnp.float32)      # [B, H, W, C]
    oh = jnp.transpose(oh, (0, 3, 1, 2))                    # [B, C, H, W]
    inter = jnp.sum(p * oh, axis=(2, 3))
    union = jnp.sum(p, axis=(2, 3)) + jnp.sum(oh, axis=(2, 3))
    dice = (2.0 * inter + smooth) / (union + smooth)
    return 1.0 - jnp.mean(dice)


if __name__ == "__main__":
    key = jax.random.PRNGKey(0)
    k1, k2 = jax.random.split(key)

    # 1) f32 logits, int32 targets, HW a multiple of 128, single chunk.
    B, C, H, W = 2, 4, 16, 16
    logits = jax.random.normal(k1, (B, C, H, W), dtype=jnp.float32)
    labels = jax.random.randint(k2, (B, H, W), 0, C, dtype=jnp.int32)
    out = jax.block_until_ready(dice_loss(logits, labels))
    ref = _dice_loss_ref(logits, labels)
    assert jnp.allclose(out, ref, atol=2e-3, rtol=2e-3), (out, ref)

    # 2) bf16 logits, HW=400 (wrapper lane-pads, tail mask on the only chunk);
    #    exercises bf16 softmax math on v6e/v7x (falls back to f32 elsewhere).
    H2, W2 = 20, 20
    logits2 = jax.random.normal(k1, (B, C, H2, W2)).astype(jnp.bfloat16)
    labels2 = jax.random.randint(k2, (B, H2, W2), 0, C, dtype=jnp.int32)
    out2 = jax.block_until_ready(dice_loss(logits2, labels2))
    ref2 = _dice_loss_ref(logits2, labels2)
    assert jnp.allclose(out2, ref2, atol=1e-2, rtol=1e-2), (out2, ref2)

    # 3) multi-chunk + 2-way spatial split (megacore path), int8 targets.
    H3 = W3 = 128
    logits3 = jax.random.normal(k1, (B, C, H3, W3), dtype=jnp.float32)
    labels3 = jax.random.randint(k2, (B, H3, W3), 0, C,
                                 dtype=jnp.int32).astype(jnp.int8)
    out3 = jax.block_until_ready(dice_loss(logits3, labels3, rows_per_chunk=32))
    ref3 = _dice_loss_ref(logits3, labels3.astype(jnp.int32))
    assert jnp.allclose(out3, ref3, atol=2e-3, rtol=2e-3), (out3, ref3)

    # 4) B=1, odd chunk count, grid-tail rows masked (BlockSpec OOB padding).
    H4 = W4 = 96
    logits4 = jax.random.normal(k1, (1, C, H4, W4), dtype=jnp.float32)
    labels4 = jax.random.randint(k2, (1, H4, W4), 0, C, dtype=jnp.int32)
    out4 = jax.block_until_ready(dice_loss(logits4, labels4, rows_per_chunk=32))
    ref4 = _dice_loss_ref(logits4, labels4)
    assert jnp.allclose(out4, ref4, atol=2e-3, rtol=2e-3), (out4, ref4)

    print("KERNEL_OK")
</pallas_src>

<mosaic_0001>
module attributes {stable_mosaic.version = 11 : i64} {
  func.func @_dice_stats_kernel(%arg0: i32, %arg1: i32, %arg2: i32, %arg3: memref<1x4x2x128xf32, #tpu.memory_space<vmem>>, %arg4: memref<1x1x2x128xi32, #tpu.memory_space<vmem>>, %arg5: memref<1x1x2x4x128xf32, #tpu.memory_space<vmem>>, %arg6: memref<4x128xf32, #tpu.memory_space<vmem>>, %arg7: memref<4x128xf32, #tpu.memory_space<vmem>>) attributes {dimension_semantics = [#tpu.dimension_semantics<parallel>, #tpu.dimension_semantics<parallel>, #tpu.dimension_semantics<arbitrary>], iteration_bounds = array<i64: 2, 1, 1>, scalar_prefetch = 0 : i64, scratch_operands = 2 : i64, tpu.core_type = #tpu.core_type<tc>, window_params = [{transform_indices = @transform_0, window_bounds = array<i64: 1, 4, 2, 128>}, {transform_indices = @transform_1, window_bounds = array<i64: 1, 1, 2, 128>}, {transform_indices = @transform_2, window_bounds = array<i64: 1, 1, 2, 4, 128>}]} {
    %c0_i32 = arith.constant 0 : i32
    %0 = arith.cmpi eq, %arg2, %c0_i32 : i32
    %1 = arith.extui %0 : i1 to i32
    %c0_i32_0 = arith.constant 0 : i32
    %2 = arith.cmpi ne, %1, %c0_i32_0 : i32
    scf.if %2 {
      %cst_67 = arith.constant 0.000000e+00 : f32
      %123 = vector.broadcast %cst_67 : f32 to vector<4x128xf32>
      %c0_68 = arith.constant 0 : index
      %c0_69 = arith.constant 0 : index
      %124 = vector.load %arg6[%c0_68, %c0_69] : memref<4x128xf32, #tpu.memory_space<vmem>>, vector<4x128xf32>
      tpu.vector_store %arg6[%c0_68, %c0_69], %123 {strides = array<i32>} : memref<4x128xf32, #tpu.memory_space<vmem>>, vector<4x128xf32>,
      %cst_70 = arith.constant 0.000000e+00 : f32
      %125 = vector.broadcast %cst_70 : f32 to vector<4x128xf32>
      %c0_71 = arith.constant 0 : index
      %c0_72 = arith.constant 0 : index
      %126 = vector.load %arg7[%c0_71, %c0_72] : memref<4x128xf32, #tpu.memory_space<vmem>>, vector<4x128xf32>
      tpu.vector_store %arg7[%c0_71, %c0_72], %125 {strides = array<i32>} : memref<4x128xf32, #tpu.memory_space<vmem>>, vector<4x128xf32>,
    } else {
    }
    %c0 = arith.constant 0 : index
    %c0_1 = arith.constant 0 : index
    %c0_2 = arith.constant 0 : index
    %c0_3 = arith.constant 0 : index
    %3 = vector.load %arg3[%c0, %c0_1, %c0_2, %c0_3] : memref<1x4x2x128xf32, #tpu.memory_space<vmem>>, vector<1x1x2x128xf32>
    %4 = vector.shape_cast %3 : vector<1x1x2x128xf32> to vector<2x128xf32>
    %c0_4 = arith.constant 0 : index
    %c1 = arith.constant 1 : index
    %c0_5 = arith.constant 0 : index
    %c0_6 = arith.constant 0 : index
    %5 = vector.load %arg3[%c0_4, %c1, %c0_5, %c0_6] : memref<1x4x2x128xf32, #tpu.memory_space<vmem>>, vector<1x1x2x128xf32>
    %6 = vector.shape_cast %5 : vector<1x1x2x128xf32> to vector<2x128xf32>
    %c0_7 = arith.constant 0 : index
    %c2 = arith.constant 2 : index
    %c0_8 = arith.constant 0 : index
    %c0_9 = arith.constant 0 : index
    %7 = vector.load %arg3[%c0_7, %c2, %c0_8, %c0_9] : memref<1x4x2x128xf32, #tpu.memory_space<vmem>>, vector<1x1x2x128xf32>
    %8 = vector.shape_cast %7 : vector<1x1x2x128xf32> to vector<2x128xf32>
    %c0_10 = arith.constant 0 : index
    %c3 = arith.constant 3 : index
    %c0_11 = arith.constant 0 : index
    %c0_12 = arith.constant 0 : index
    %9 = vector.load %arg3[%c0_10, %c3, %c0_11, %c0_12] : memref<1x4x2x128xf32, #tpu.memory_space<vmem>>, vector<1x1x2x128xf32>
    %10 = vector.shape_cast %9 : vector<1x1x2x128xf32> to vector<2x128xf32>
    %11 = arith.maximumf %4, %6 : vector<2x128xf32>
    %12 = arith.maximumf %11, %8 : vector<2x128xf32>
    %13 = arith.maximumf %12, %10 : vector<2x128xf32>
    %14 = arith.subf %4, %13 : vector<2x128xf32>
    %15 = math.exp %14 : vector<2x128xf32>
    %16 = arith.subf %6, %13 : vector<2x128xf32>
    %17 = math.exp %16 : vector<2x128xf32>
    %18 = arith.subf %8, %13 : vector<2x128xf32>
    %19 = math.exp %18 : vector<2x128xf32>
    %20 = arith.subf %10, %13 : vector<2x128xf32>
    %21 = math.exp %20 : vector<2x128xf32>
    %22 = arith.addf %15, %17 : vector<2x128xf32>
    %23 = arith.addf %22, %19 : vector<2x128xf32>
    %24 = arith.addf %23, %21 : vector<2x128xf32>
    %25 = tpu.reciprocal %24 {approx = true} : vector<2x128xf32> -> vector<2x128xf32>
    %26 = arith.mulf %15, %25 : vector<2x128xf32>
    %27 = arith.mulf %17, %25 : vector<2x128xf32>
    %28 = arith.mulf %19, %25 : vector<2x128xf32>
    %29 = arith.mulf %21, %25 : vector<2x128xf32>
    %c0_13 = arith.constant 0 : index
    %c0_14 = arith.constant 0 : index
    %c0_15 = arith.constant 0 : index
    %c0_16 = arith.constant 0 : index
    %30 = vector.load %arg4[%c0_13, %c0_14, %c0_15, %c0_16] : memref<1x1x2x128xi32, #tpu.memory_space<vmem>>, vector<1x1x2x128xi32>
    %31 = vector.shape_cast %30 : vector<1x1x2x128xi32> to vector<2x128xi32>
    %c0_i32_17 = arith.constant 0 : i32
    %32 = vector.broadcast %c0_i32_17 : i32 to vector<2x128xi32>
    %33 = arith.cmpi eq, %31, %32 : vector<2x128xi32>
    %c0_18 = arith.constant 0 : index
    %c0_19 = arith.constant 0 : index
    %34 = vector.load %arg6[%c0_18, %c0_19] : memref<4x128xf32, #tpu.memory_space<vmem>>, vector<1x128xf32>
    %35 = vector.shape_cast %34 : vector<1x128xf32> to vector<128xf32>
    %cst = arith.constant 0.000000e+00 : f32
    %36 = vector.broadcast %cst : f32 to vector<2x128xf32>
    %37 = arith.select %33, %26, %36 : vector<2x128xi1>, vector<2x128xf32>
    %cst_20 = arith.constant dense<0.000000e+00> : vector<128xf32>
    %38 = vector.multi_reduction <add>, %37, %cst_20 [0] : vector<2x128xf32> to vector<128xf32>
    %39 = arith.addf %35, %38 : vector<128xf32>
    %c0_21 = arith.constant 0 : index
    %c0_22 = arith.constant 0 : index
    %40 = vector.load %arg6[%c0_21, %c0_22] : memref<4x128xf32, #tpu.memory_space<vmem>>, vector<1x128xf32>
    %41 = vector.shape_cast %40 : vector<1x128xf32> to vector<128xf32>
    %42 = vector.shape_cast %39 : vector<128xf32> to vector<1x128xf32>
    tpu.vector_store %arg6[%c0_21, %c0_22], %42 {strides = array<i32>} : memref<4x128xf32, #tpu.memory_space<vmem>>, vector<1x128xf32>,
    %c0_23 = arith.constant 0 : index
    %c0_24 = arith.constant 0 : index
    %43 = vector.load %arg7[%c0_23, %c0_24] : memref<4x128xf32, #tpu.memory_space<vmem>>, vector<1x128xf32>
    %44 = vector.shape_cast %43 : vector<1x128xf32> to vector<128xf32>
    %cst_25 = arith.constant dense<0.000000e+00> : vector<128xf32>
    %45 = vector.multi_reduction <add>, %26, %cst_25 [0] : vector<2x128xf32> to vector<128xf32>
    %46 = arith.extui %33 : vector<2x128xi1> to vector<2x128xi32>
    %47 = arith.sitofp %46 : vector<2x128xi32> to vector<2x128xf32>
    %cst_26 = arith.constant dense<0.000000e+00> : vector<128xf32>
    %48 = vector.multi_reduction <add>, %47, %cst_26 [0] : vector<2x128xf32> to vector<128xf32>
    %49 = arith.addf %45, %48 : vector<128xf32>
    %50 = arith.addf %44, %49 : vector<128xf32>
    %c0_27 = arith.constant 0 : index
    %c0_28 = arith.constant 0 : index
    %51 = vector.load %arg7[%c0_27, %c0_28] : memref<4x128xf32, #tpu.memory_space<vmem>>, vector<1x128xf32>
    %52 = vector.shape_cast %51 : vector<1x128xf32> to vector<128xf32>
    %53 = vector.shape_cast %50 : vector<128xf32> to vector<1x128xf32>
    tpu.vector_store %arg7[%c0_27, %c0_28], %53 {strides = array<i32>} : memref<4x128xf32, #tpu.memory_space<vmem>>, vector<1x128xf32>,
    %c1_i32 = arith.constant 1 : i32
    %54 = vector.broadcast %c1_i32 : i32 to vector<2x128xi32>
    %55 = arith.cmpi eq, %31, %54 : vector<2x128xi32>
    %c1_29 = arith.constant 1 : index
    %c0_30 = arith.constant 0 : index
    %56 = vector.load %arg6[%c1_29, %c0_30] : memref<4x128xf32, #tpu.memory_space<vmem>>, vector<1x128xf32>
    %57 = vector.shape_cast %56 : vector<1x128xf32> to vector<128xf32>
    %cst_31 = arith.constant 0.000000e+00 : f32
    %58 = vector.broadcast %cst_31 : f32 to vector<2x128xf32>
    %59 = arith.select %55, %27, %58 : vector<2x128xi1>, vector<2x128xf32>
    %cst_32 = arith.constant dense<0.000000e+00> : vector<128xf32>
    %60 = vector.multi_reduction <add>, %59, %cst_32 [0] : vector<2x128xf32> to vector<128xf32>
    %61 = arith.addf %57, %60 : vector<128xf32>
    %c1_33 = arith.constant 1 : index
    %c0_34 = arith.constant 0 : index
    %62 = vector.load %arg6[%c1_33, %c0_34] : memref<4x128xf32, #tpu.memory_space<vmem>>, vector<1x128xf32>
    %63 = vector.shape_cast %62 : vector<1x128xf32> to vector<128xf32>
    %64 = vector.shape_cast %61 : vector<128xf32> to vector<1x128xf32>
    tpu.vector_store %arg6[%c1_33, %c0_34], %64 {strides = array<i32>} : memref<4x128xf32, #tpu.memory_space<vmem>>, vector<1x128xf32>,
    %c1_35 = arith.constant 1 : index
    %c0_36 = arith.constant 0 : index
    %65 = vector.load %arg7[%c1_35, %c0_36] : memref<4x128xf32, #tpu.memory_space<vmem>>, vector<1x128xf32>
    %66 = vector.shape_cast %65 : vector<1x128xf32> to vector<128xf32>
    %cst_37 = arith.constant dense<0.000000e+00> : vector<128xf32>
    %67 = vector.multi_reduction <add>, %27, %cst_37 [0] : vector<2x128xf32> to vector<128xf32>
    %68 = arith.extui %55 : vector<2x128xi1> to vector<2x128xi32>
    %69 = arith.sitofp %68 : vector<2x128xi32> to vector<2x128xf32>
    %cst_38 = arith.constant dense<0.000000e+00> : vector<128xf32>
    %70 = vector.multi_reduction <add>, %69, %cst_38 [0] : vector<2x128xf32> to vector<128xf32>
    %71 = arith.addf %67, %70 : vector<128xf32>
    %72 = arith.addf %66, %71 : vector<128xf32>
    %c1_39 = arith.constant 1 : index
    %c0_40 = arith.constant 0 : index
    %73 = vector.load %arg7[%c1_39, %c0_40] : memref<4x128xf32, #tpu.memory_space<vmem>>, vector<1x128xf32>
    %74 = vector.shape_cast %73 : vector<1x128xf32> to vector<128xf32>
    %75 = vector.shape_cast %72 : vector<128xf32> to vector<1x128xf32>
    tpu.vector_store %arg7[%c1_39, %c0_40], %75 {strides = array<i32>} : memref<4x128xf32, #tpu.memory_space<vmem>>, vector<1x128xf32>,
    %c2_i32 = arith.constant 2 : i32
    %76 = vector.broadcast %c2_i32 : i32 to vector<2x128xi32>
    %77 = arith.cmpi eq, %31, %76 : vector<2x128xi32>
    %c2_41 = arith.constant 2 : index
    %c0_42 = arith.constant 0 : index
    %78 = vector.load %arg6[%c2_41, %c0_42] : memref<4x128xf32, #tpu.memory_space<vmem>>, vector<1x128xf32>
    %79 = vector.shape_cast %78 : vector<1x128xf32> to vector<128xf32>
    %cst_43 = arith.constant 0.000000e+00 : f32
    %80 = vector.broadcast %cst_43 : f32 to vector<2x128xf32>
    %81 = arith.select %77, %28, %80 : vector<2x128xi1>, vector<2x128xf32>
    %cst_44 = arith.constant dense<0.000000e+00> : vector<128xf32>
    %82 = vector.multi_reduction <add>, %81, %cst_44 [0] : vector<2x128xf32> to vector<128xf32>
    %83 = arith.addf %79, %82 : vector<128xf32>
    %c2_45 = arith.constant 2 : index
    %c0_46 = arith.constant 0 : index
    %84 = vector.load %arg6[%c2_45, %c0_46] : memref<4x128xf32, #tpu.memory_space<vmem>>, vector<1x128xf32>
    %85 = vector.shape_cast %84 : vector<1x128xf32> to vector<128xf32>
    %86 = vector.shape_cast %83 : vector<128xf32> to vector<1x128xf32>
    tpu.vector_store %arg6[%c2_45, %c0_46], %86 {strides = array<i32>} : memref<4x128xf32, #tpu.memory_space<vmem>>, vector<1x128xf32>,
    %c2_47 = arith.constant 2 : index
    %c0_48 = arith.constant 0 : index
    %87 = vector.load %arg7[%c2_47, %c0_48] : memref<4x128xf32, #tpu.memory_space<vmem>>, vector<1x128xf32>
    %88 = vector.shape_cast %87 : vector<1x128xf32> to vector<128xf32>
    %cst_49 = arith.constant dense<0.000000e+00> : vector<128xf32>
    %89 = vector.multi_reduction <add>, %28, %cst_49 [0] : vector<2x128xf32> to vector<128xf32>
    %90 = arith.extui %77 : vector<2x128xi1> to vector<2x128xi32>
    %91 = arith.sitofp %90 : vector<2x128xi32> to vector<2x128xf32>
    %cst_50 = arith.constant dense<0.000000e+00> : vector<128xf32>
    %92 = vector.multi_reduction <add>, %91, %cst_50 [0] : vector<2x128xf32> to vector<128xf32>
    %93 = arith.addf %89, %92 : vector<128xf32>
    %94 = arith.addf %88, %93 : vector<128xf32>
    %c2_51 = arith.constant 2 : index
    %c0_52 = arith.constant 0 : index
    %95 = vector.load %arg7[%c2_51, %c0_52] : memref<4x128xf32, #tpu.memory_space<vmem>>, vector<1x128xf32>
    %96 = vector.shape_cast %95 : vector<1x128xf32> to vector<128xf32>
    %97 = vector.shape_cast %94 : vector<128xf32> to vector<1x128xf32>
    tpu.vector_store %arg7[%c2_51, %c0_52], %97 {strides = array<i32>} : memref<4x128xf32, #tpu.memory_space<vmem>>, vector<1x128xf32>,
    %c3_i32 = arith.constant 3 : i32
    %98 = vector.broadcast %c3_i32 : i32 to vector<2x128xi32>
    %99 = arith.cmpi eq, %31, %98 : vector<2x128xi32>
    %c3_53 = arith.constant 3 : index
    %c0_54 = arith.constant 0 : index
    %100 = vector.load %arg6[%c3_53, %c0_54] : memref<4x128xf32, #tpu.memory_space<vmem>>, vector<1x128xf32>
    %101 = vector.shape_cast %100 : vector<1x128xf32> to vector<128xf32>
    %cst_55 = arith.constant 0.000000e+00 : f32
    %102 = vector.broadcast %cst_55 : f32 to vector<2x128xf32>
    %103 = arith.select %99, %29, %102 : vector<2x128xi1>, vector<2x128xf32>
    %cst_56 = arith.constant dense<0.000000e+00> : vector<128xf32>
    %104 = vector.multi_reduction <add>, %103, %cst_56 [0] : vector<2x128xf32> to vector<128xf32>
    %105 = arith.addf %101, %104 : vector<128xf32>
    %c3_57 = arith.constant 3 : index
    %c0_58 = arith.constant 0 : index
    %106 = vector.load %arg6[%c3_57, %c0_58] : memref<4x128xf32, #tpu.memory_space<vmem>>, vector<1x128xf32>
    %107 = vector.shape_cast %106 : vector<1x128xf32> to vector<128xf32>
    %108 = vector.shape_cast %105 : vector<128xf32> to vector<1x128xf32>
    tpu.vector_store %arg6[%c3_57, %c0_58], %108 {strides = array<i32>} : memref<4x128xf32, #tpu.memory_space<vmem>>, vector<1x128xf32>,
    %c3_59 = arith.constant 3 : index
    %c0_60 = arith.constant 0 : index
    %109 = vector.load %arg7[%c3_59, %c0_60] : memref<4x128xf32, #tpu.memory_space<vmem>>, vector<1x128xf32>
    %110 = vector.shape_cast %109 : vector<1x128xf32> to vector<128xf32>
    %cst_61 = arith.constant dense<0.000000e+00> : vector<128xf32>
    %111 = vector.multi_reduction <add>, %29, %cst_61 [0] : vector<2x128xf32> to vector<128xf32>
    %112 = arith.extui %99 : vector<2x128xi1> to vector<2x128xi32>
    %113 = arith.sitofp %112 : vector<2x128xi32> to vector<2x128xf32>
    %cst_62 = arith.constant dense<0.000000e+00> : vector<128xf32>
    %114 = vector.multi_reduction <add>, %113, %cst_62 [0] : vector<2x128xf32> to vector<128xf32>
    %115 = arith.addf %111, %114 : vector<128xf32>
    %116 = arith.addf %110, %115 : vector<128xf32>
    %c3_63 = arith.constant 3 : index
    %c0_64 = arith.constant 0 : index
    %117 = vector.load %arg7[%c3_63, %c0_64] : memref<4x128xf32, #tpu.memory_space<vmem>>, vector<1x128xf32>
    %118 = vector.shape_cast %117 : vector<1x128xf32> to vector<128xf32>
    %119 = vector.shape_cast %116 : vector<128xf32> to vector<1x128xf32>
    tpu.vector_store %arg7[%c3_63, %c0_64], %119 {strides = array<i32>} : memref<4x128xf32, #tpu.memory_space<vmem>>, vector<1x128xf32>,
    %c0_i32_65 = arith.constant 0 : i32
    %120 = arith.cmpi eq, %arg2, %c0_i32_65 : i32
    %121 = arith.extui %120 : i1 to i32
    %c0_i32_66 = arith.constant 0 : i32
    %122 = arith.cmpi ne, %121, %c0_i32_66 : i32
    scf.if %122 {
      %c0_67 = arith.constant 0 : index
      %c0_68 = arith.constant 0 : index
      %123 = vector.load %arg6[%c0_67, %c0_68] : memref<4x128xf32, #tpu.memory_space<vmem>>, vector<4x128xf32>
      %c0_69 = arith.constant 0 : index
      %c0_70 = arith.constant 0 : index
      %c0_71 = arith.constant 0 : index
      %c0_72 = arith.constant 0 : index
      %c0_73 = arith.constant 0 : index
      %124 = vector.load %arg5[%c0_69, %c0_70, %c0_71, %c0_72, %c0_73] : memref<1x1x2x4x128xf32, #tpu.memory_space<vmem>>, vector<1x1x1x4x128xf32>
      %125 = vector.shape_cast %124 : vector<1x1x1x4x128xf32> to vector<4x128xf32>
      %126 = vector.shape_cast %123 : vector<4x128xf32> to vector<1x1x1x4x128xf32>
      tpu.vector_store %arg5[%c0_69, %c0_70, %c0_71, %c0_72, %c0_73], %126 {strides = array<i32>} : memref<1x1x2x4x128xf32, #tpu.memory_space<vmem>>, vector<1x1x1x4x128xf32>,
      %c0_74 = arith.constant 0 : index
      %c0_75 = arith.constant 0 : index
      %127 = vector.load %arg7[%c0_74, %c0_75] : memref<4x128xf32, #tpu.memory_space<vmem>>, vector<4x128xf32>
      %c0_76 = arith.constant 0 : index
      %c0_77 = arith.constant 0 : index
      %c1_78 = arith.constant 1 : index
      %c0_79 = arith.constant 0 : index
      %c0_80 = arith.constant 0 : index
      %128 = vector.load %arg5[%c0_76, %c0_77, %c1_78, %c0_79, %c0_80] : memref<1x1x2x4x128xf32, #tpu.memory_space<vmem>>, vector<1x1x1x4x128xf32>
      %129 = vector.shape_cast %128 : vector<1x1x1x4x128xf32> to vector<4x128xf32>
      %130 = vector.shape_cast %127 : vector<4x128xf32> to vector<1x1x1x4x128xf32>
      tpu.vector_store %arg5[%c0_76, %c0_77, %c1_78, %c0_79, %c0_80], %130 {strides = array<i32>} : memref<1x1x2x4x128xf32, #tpu.memory_space<vmem>>, vector<1x1x1x4x128xf32>,
    } else {
    }
    return
  }
  func.func @transform_0(%arg0: i32, %arg1: i32, %arg2: i32) -> (i32, i32, i32, i32) {
    %c1_i32 = arith.constant 1 : i32
    %0 = arith.muli %arg1, %c1_i32 : i32
    %1 = arith.addi %0, %arg2 : i32
    %c0_i32 = arith.constant 0 : i32
    %c0_i32_0 = arith.constant 0 : i32
    %c0_i32_1 = arith.constant 0 : i32
    return %arg0, %c0_i32, %1, %c0_i32_0 : i32, i32, i32, i32
  }
  func.func @transform_1(%arg0: i32, %arg1: i32, %arg2: i32) -> (i32, i32, i32, i32) {
    %c1_i32 = arith.constant 1 : i32
    %0 = arith.muli %arg1, %c1_i32 : i32
    %1 = arith.addi %0, %arg2 : i32
    %c0_i32 = arith.constant 0 : i32
    %c0_i32_0 = arith.constant 0 : i32
    %c0_i32_1 = arith.constant 0 : i32
    return %arg0, %c0_i32, %1, %c0_i32_0 : i32, i32, i32, i32
  }
  func.func @transform_2(%arg0: i32, %arg1: i32, %arg2: i32) -> (i32, i32, i32, i32, i32) {
    %c0_i32 = arith.constant 0 : i32
    %c0_i32_0 = arith.constant 0 : i32
    %c0_i32_1 = arith.constant 0 : i32
    %c0_i32_2 = arith.constant 0 : i32
    return %arg0, %arg1, %c0_i32, %c0_i32_0, %c0_i32_1 : i32, i32, i32, i32, i32
  }
}

</mosaic_0001>

<bundles_post_ra>
// kernel: tpu_custom_call.1
= control target key start
LH: loop header
LB: loop body
LE: loop exit
PB: predicated region body
PF: predicated region fallthrough
CT: control target
= control target key end

     0   :  { %7 = vsyncpa [#allocation5], 0  ;;  %s1040_s0 = inlined_call_operand.hbm [shape: f32[2,4,2,128], index: 0, kind: input, shape index: {}]   ;;  %s1041_s1 = inlined_call_operand.hbm [shape: s32[2,1,2,128], index: 1, kind: input, shape index: {}]   ;;  %s1042_s2 = inlined_call_operand.hbm [shape: f32[2,1,2,4,128], index: 2, kind: output, shape index: {}]  }
   0x1   :  { %9 = vsyncpa [#allocation5 + $0x1], 0 }
   0x2   :  { %10 = vsyncpa [#allocation8], 0 }
   0x3   :  { %12 = vsyncpa [#allocation8 + $0x1], 0 }
   0x4   :  { %13 = vsyncpa [#allocation6], 0 }
   0x5   :  { %15 = vsyncpa [#allocation6 + $0x1], 0  ;;  %s814_s9 = smov 0   ;;  %s816_s10 = smov 0  }
   0x6   :  { %s818_s11 = smov 0   ;;  %s820_s12 = smov 0  }
   0x7   :  { %s822_s13 = smov 0   ;;  %s824_s14 = smov 0  }
   0x8 LB: > { %s539_s15 = sadd.s32 4294967295, %s789_s14   ;;  %s540_s16 = sadd.s32 4294967294, %s789_s14   ;;  %s789_s14 = sphi %s824_s14, %s21_s14   ;;  %s785_s13 = sphi %s822_s13, %s1053_s13   ;;  %s781_s12 = sphi %s820_s12, %s1052_s12   ;;  %s777_s11 = sphi %s818_s11, %s1051_s11   ;;  %s773_s10 = sphi %s816_s10, %s1050_s10   ;;  %s769_s9 = sphi %s814_s9, %s1049_s9  }
   0x9   : > { %s40_s17 = sadd.s32 1, %s785_s13  ;;  %s51_s18 = sadd.s32 1, %s777_s11 }
   0xa   : > { %p42_p0 = scmp.ge.s32.totalorder %s40_s17, 2  ;;  %p58_p1 = scmp.ne.s32.totalorder %s777_s11, %s773_s10 }
   0xb   : > { %p59_p2 = scmp.eq.s32.totalorder %s789_s14, 0  ;;  %p64_p3 = scmp.ne.s32.totalorder %s773_s10, %s769_s9 }
   0xc   : > { %s1055_s17 = smov (%p42_p0, %s40_s17), 0  ;;  %p65_p5 = scmp.eq.s32.totalorder %s539_s15, 0 }
   0xd   : > { %p855_p4 = por %p59_p2, %p58_p1  ;;  %s46_s20 = ssub.s32 %s785_s13, %s1055_s17 }
   0xe   : > { %p120_p6 = scmp.eq.s32.totalorder %s539_s15, 1  ;;  %p49_p7 = scmp.eq.s32.totalorder %s46_s20, 0 }
   0xf   : > { %p861_p8 = por %p65_p5, %p64_p3  ;;  %p126_p10 = scmp.eq.s32.totalorder %s540_s16, 1 }
  0x10   : > { %p865_p9 = por %p120_p6, %p58_p1  ;;  %p542_p12 = scmp.ge.s32.totalorder %s789_s14, 2 }
  0x11   : > { %s870_s23 = scalar_select %p49_p7, %s777_s11, %s51_s18  }
  0x12   : > { %p872_p11 = por %p126_p10, %p64_p3  ;;  %p584_p13 = scmp.lt.s32.totalorder %s789_s14, 2 }
  0x13   : > { %s879_s25 = sand.u32 1, %s777_s11   ;;  %s565_s27 = sshll.u32 %s785_s13, 7 }
  0x14   : > { %s543_s26 = sshll.u32 %s879_s25, 3  ;;  %s158_s30 = scalar_lea.hbm %s1040_s0, %s565_s27 }
  0x15   : > { %s150_s3 = scalar_lea.vmem [#allocation4], %s543_s26  ;;  %p888_p0 = pnand %p584_p13, %p855_p4 }
  0x16   : > { %s159_s4 = sshll.u32 %s150_s3, 4  ;;  %p548_p1 = scmp.ge.s32.totalorder %s789_s14, 1  ;;  %s160_s4 = int_to_ptr.vmem [resolvable:$true] %s159_s4 }
  0x17   : > { %s147_s6 = scalar_lea.sflag [#allocation5], %s879_s25  ;;  %p651_p2 = pneg %p888_p0 }
  0x18   : > { %s662_s7 = scalar_lea.vmem %s160_s4, 128  ;;  %s791_s8 = smov [#allocation4]  }
  0x19   : > { %p663_p3 = scmp.ne.s32.totalorder %s160_s4, %s662_s7  ;;  %s667_s15 = sshll.u32 %s791_s8, 4  ;;  %s668_s15 = int_to_ptr.vmem [resolvable:$false] %s667_s15 }
  0x1a   : > { %s669_s16 = scalar_lea.vmem %s668_s15, 256  ;;  %p670_p4 = scmp.lt.s32.totalorder %s160_s4, %s668_s15 }
  0x1b   : > { %p665_p5 = pnand %p663_p3, %p651_p2  ;;  %p671_p7 = scmp.lt.s32.totalorder %s669_s16, %s662_s7 }
  0x1d   : > { %p666_p6 = pneg %p665_p5  ;;  %p672_p10 = por %p671_p7, %p670_p4 }
  0x1f   : > { %p673_p13 = pnand %p672_p10, %p666_p6 }
  0x21   : > { %676 = shalt.err (!%p673_p13)
}
  0x22   : > { %s792_s18 = smov 32   ;;  %s793_s19 = smov 2  }
  0x23   : > { %576 = dma.hbm_to_vmem [thread:$0]  (!%p888_p0), %s158_s30, 128, %s160_s4, %s147_s6, %s792_s18, %s792_s18, %s793_s19  }
  0x24   : > { %p187_p3 = scmp.lt.s32.totalorder %s789_s14, 3  ;;  %s546_s20 = sshll.u32 %s879_s25, 1 }
  0x25   : > { %s547_s26 = sshll.u32 %s785_s13, 5  ;;  %s173_s7 = scalar_lea.vmem [#allocation7], %s546_s20 }
  0x26   : > { %p906_p5 = pnand %p548_p1, %p187_p3  ;;  %s180_s3 = scalar_lea.hbm %s1041_s1, %s547_s26 }
  0x27   : > { %s182_s8 = sshll.u32 %s173_s7, 4  ;;  %s170_s15 = scalar_lea.sflag [#allocation8], %s879_s25  ;;  %s183_s8 = int_to_ptr.vmem [resolvable:$true] %s182_s8 }
  0x28   : > { %s690_s16 = scalar_lea.vmem %s183_s8, 32  ;;  %s794_s30 = smov [#allocation7]  }
  0x29   : > { %p691_p6 = scmp.ne.s32.totalorder %s183_s8, %s690_s16  ;;  %s695_s4 = sshll.u32 %s794_s30, 4  ;;  %s696_s4 = int_to_ptr.vmem [resolvable:$false] %s695_s4 }
  0x2a   : > { %s697_s6 = scalar_lea.vmem %s696_s4, 64  ;;  %p698_p1 = scmp.lt.s32.totalorder %s183_s8, %s696_s4 }
  0x2b   : > { %p693_p4 = pnand %p691_p6, %p651_p2  ;;  %p699_p10 = scmp.lt.s32.totalorder %s697_s6, %s690_s16 }
  0x2d   : > { %p694_p7 = pneg %p693_p4  ;;  %p700_p13 = por %p699_p10, %p698_p1 }
  0x2f   : > { %p701_p3 = pnand %p700_p13, %p694_p7 }
  0x31   : > { %704 = shalt.err (!%p701_p3)
}
  0x32   : > { %579 = dma.hbm_to_vmem [thread:$0]  (!%p888_p0), %s180_s3, 32, %s183_s8, %s170_s15  }
  0x33   : > { %191 = sbr.rel (%p906_p5) target bundleno = 155 (0x9b), region = 28  ;;  %s922_s25 = sand.u32 (!%p906_p5), 1, %s773_s10  }
  0x34   : > { %s549_s18 = sshll.u32 (!%p906_p5), %s922_s25, 3  ;;  %s194_s19 = scalar_lea.sflag (!%p906_p5), [#allocation5], %s922_s25 }
  0x35   : > { %s197_s20 = scalar_lea.vmem (!%p906_p5), [#allocation4], %s549_s18 }
  0x38   : > { %756 = dma.done.wait (%p861_p8), %s194_s19, 128  }
  0x39   : > { %758 = vsyncadd (%p861_p8), %s194_s19, 4294967168  ;;  %s550_s5 = sshll.u32 %s922_s25, 1  ;;  %s203_s26 = scalar_lea.sflag [#allocation8], %s922_s25 }
  0x3a   : > { %s206_s27 = scalar_lea.vmem [#allocation7], %s550_s5 }
  0x3b   : > { %760 = dma.done.wait (%p861_p8), %s203_s26, 32  }
  0x3c   : > { %762 = vsyncadd (%p861_p8), %s203_s26, 4294967264  ;;  %v795_v0 = vmov 0.0   ;;  %v240_v1 = vld [vmem:[%s197_s20] sm:$0x3]  ;;  %v552_v2 = vld [vmem:[%s197_s20 + $0x2] sm:$0x3] }
  0x3d   : > { %238 = vst [vmem:[#allocation2] sm:$0xf] %v795_v0  ;;  %239 = vst [vmem:[#allocation3] sm:$0xf] %v795_v0  ;;  %v553_v3 = vld [vmem:[%s197_s20 + $0x4] sm:$0x3]  ;;  %v247_v4 = vmax.f32 %v240_v1, %v552_v2 }
  0x3e   : > { %v554_v5 = vld [vmem:[%s197_s20 + $0x6] sm:$0x3]  ;;  %v938_v16 = vld [vmem:[%s206_s27] sm:$0x3]  ;;  %vm274_vm3 = vcmask 1041408   ;;  %s231_s21 = scalar_lea.vmem [#allocation9], %s549_s18 }
  0x3f   : > { %v248_v6 = vmax.f32 %v247_v4, %v553_v3  ;;  %vm271_vm0 = vcmp.eq.s32.totalorder %v938_v16, 0  ;;  %vm304_vm1 = vcmp.eq.s32.totalorder %v938_v16, 1  ;;  %vm336_vm2 = vcmp.eq.s32.totalorder %v938_v16, 2  ;;  %s424_s28 = sshll.u32 %s231_s21, 4  ;;  %s566_s29 = sshll.u32 %s781_s12, 7  ;;  %s987_s28 = int_to_ptr.vmem [resolvable:$true] %s424_s28 }
  0x40   : > { %v555_v17 = vsel %vm271_vm0, 1.0, %v795_v0  ;;  %v556_v18 = vsel %vm304_vm1, 1.0, %v795_v0  ;;  %v557_v19 = vsel %vm336_vm2, 1.0, %v795_v0  ;;  %vm368_vm4 = vcmp.eq.s32.totalorder %v938_v16, 3  ;;  %s992_s8 = scalar_lea.hbm %s1042_s2, %s566_s29  ;;  %s409_s15 = scalar_lea.sflag [#allocation6], %s922_s25 }
  0x41   : > { %v249_v7 = vmax.f32 %v248_v6, %v554_v5  ;;  %v294_v20 = vsel %vm274_vm3, %v555_v17, 0.0  ;;  %v326_v22 = vsel %vm274_vm3, %v556_v18, 0.0  ;;  %v358_v23 = vsel %vm274_vm3, %v557_v19, 0.0  ;;  %s705_s16 = scalar_lea.vmem %s987_s28, 128  ;;  %s796_s12 = smov [#allocation9]  }
  0x42   : > { %v558_v25 = vsel %vm368_vm4, 1.0, %v795_v0  ;;  %v295_v28 = vrot.slane %v294_v20, 4  ;;  %v327_v30 = vrot.slane %v326_v22, 4  ;;  %v359_v31 = vrot.slane %v358_v23, 4  ;;  %p706_p8 = scmp.ne.s32.totalorder %s987_s28, %s705_s16  ;;  %s709_s30 = sshll.u32 %s796_s12, 4  ;;  %s710_s30 = int_to_ptr.vmem [resolvable:$false] %s709_s30 }
  0x43   : > { %v250_v8 = vsub.f32 %v240_v1, %v249_v7  ;;  %v253_v9 = vsub.f32 %v552_v2, %v249_v7  ;;  %v256_v10 = vsub.f32 %v553_v3, %v249_v7  ;;  %v259_v11 = vsub.f32 %v554_v5, %v249_v7  ;;  %s711_s4 = scalar_lea.vmem %s710_s30, 256  ;;  %p712_p5 = scmp.lt.s32.totalorder %s987_s28, %s710_s30 }
  0x44   : > { %v390_v33 = vsel %vm274_vm3, %v558_v25, 0.0  ;;  %v296_v35 = vadd.f32 %v295_v28, %v294_v20  ;;  %v328_v36 = vadd.f32 %v327_v30, %v326_v22  ;;  %v360_v37 = vadd.f32 %v359_v31, %v358_v23  ;;  %p707_p0 = pnand %p706_p8, %p865_p9  ;;  %p713_p6 = scmp.lt.s32.totalorder %s711_s4, %s705_s16 }
  0x45   : > { %v251_v12 = vmul.f32 1.442695, %v250_v8  ;;  %v254_v13 = vmul.f32 1.442695, %v253_v9  ;;  %v257_v14 = vmul.f32 1.442695, %v256_v10 }
  0x46   : > { %v260_v15 = vmul.f32 1.442695, %v259_v11  ;;  %v391_v38 = vrot.slane %v390_v33, 4  ;;  %v297_v39 = vrot.slane %v296_v35, 2  ;;  %v329_v40 = vrot.slane %v328_v36, 2  ;;  %p708_p2 = pneg %p707_p0  ;;  %p714_p4 = por %p713_p6, %p712_p5 }
  0x47   : > { %639 = vpow2.f32 %v251_v12  ;;  %v361_v41 = vrot.slane %v360_v37, 2 }
  0x48   : > { %641 = vpow2.f32 %v254_v13  ;;  %v392_v42 = vadd.f32 %v391_v38, %v390_v33  ;;  %v298_v43 = vadd.f32 %v297_v39, %v296_v35  ;;  %v330_v44 = vadd.f32 %v329_v40, %v328_v36  ;;  %v272_v40 = vld [vmem:[#allocation2] sm:$0x1]  ;;  %p715_p7 = pnand %p714_p4, %p708_p2 }
  0x49   : > { %643 = vpow2.f32 %v257_v14  ;;  %v362_v45 = vadd.f32 %v361_v41, %v360_v37 }
  0x4a   : > { %645 = vpow2.f32 %v260_v15  ;;  %v393_v46 = vrot.slane %v392_v42, 2  ;;  %v299_v47 = vrot.slane %v298_v43, 1  ;;  %v331_v48 = vrot.slane %v330_v44, 1 }
  0x4b   : > { %v363_v49 = vrot.slane %v362_v45, 1 }
  0x4c   : > { %v956_v50 = vadd.f32 %v393_v46, %v392_v42  ;;  %v958_v53 = vadd.f32 %v299_v47, %v298_v43  ;;  %v332_v56 = vadd.f32 %v331_v48, %v330_v44  ;;  %v305_v42 = vld [vmem:[#allocation2 + $0x1] sm:$0x1]  ;;  %v284_v47 = vld [vmem:[#allocation3] sm:$0x1] }
  0x4d   : > { %v960_v57 = vadd.f32 %v363_v49, %v362_v45  ;;  %v316_v49 = vld [vmem:[#allocation3 + $0x1] sm:$0x1] }
  0x4e   : > { %v395_v59 = vrot.slane %v956_v50, 1 }
  0x54   : > { %v640_v21 = vpop.eup %639 }
  0x55   : > { %v642_v24 = vpop.eup %641 }
  0x56   : > { %v644_v26 = vpop.eup %643  ;;  %v262_v27 = vadd.f32 %v642_v24, %v640_v21 }
  0x57   : > { %v646_v29 = vpop.eup %645 }
  0x58   : > { %v263_v32 = vadd.f32 %v644_v26, %v262_v27 }
  0x5a   : > { %v264_v34 = vadd.f32 %v646_v29, %v263_v32 }
  0x5c   : > { %647 = vrcp.f32 %v264_v34 }
  0x69   : > { %v648_v51 = vpop.eup %647 }
  0x6a   : > { %v266_v52 = vmul.f32 %v648_v51, %v640_v21  ;;  %v267_v54 = vmul.f32 %v648_v51, %v642_v24  ;;  %v268_v55 = vmul.f32 %v648_v51, %v644_v26  ;;  %v269_v58 = vmul.f32 %v648_v51, %v646_v29 }
  0x6c   : > { %v273_v60 = vsel %vm271_vm0, %v266_v52, 0.0  ;;  %v285_v61 = vsel %vm274_vm3, %v266_v52, 0.0  ;;  %v306_v62 = vsel %vm304_vm1, %v267_v54, 0.0  ;;  %v317_v63 = vsel %vm274_vm3, %v267_v54, 0.0 }
  0x6d   : > { %v275_v0 = vsel %vm274_vm3, %v273_v60, 0.0  ;;  %v286_v1 = vrot.slane %v285_v61, 4  ;;  %v307_v2 = vsel %vm274_vm3, %v306_v62, 0.0  ;;  %v318_v3 = vrot.slane %v317_v63, 4 }
  0x6e   : > { %v276_v4 = vrot.slane %v275_v0, 4  ;;  %v308_v5 = vrot.slane %v307_v2, 4  ;;  %v338_v6 = vsel %vm336_vm2, %v268_v55, 0.0  ;;  %v349_v7 = vsel %vm274_vm3, %v268_v55, 0.0 }
  0x6f   : > { %v287_v8 = vadd.f32 %v286_v1, %v285_v61  ;;  %v319_v9 = vadd.f32 %v318_v3, %v317_v63  ;;  %v339_v10 = vsel %vm274_vm3, %v338_v6, 0.0  ;;  %v350_v11 = vrot.slane %v349_v7, 4  ;;  %v348_v1 = vld [vmem:[#allocation3 + $0x2] sm:$0x1]  ;;  %v369_v6 = vld [vmem:[#allocation2 + $0x3] sm:$0x1] }
  0x70   : > { %v277_v12 = vadd.f32 %v276_v4, %v275_v0  ;;  %v309_v13 = vadd.f32 %v308_v5, %v307_v2  ;;  %v340_v14 = vrot.slane %v339_v10, 4  ;;  %v370_v15 = vsel %vm368_vm4, %v269_v58, 0.0 }
  0x71   : > { %v288_v17 = vrot.slane %v287_v8, 2  ;;  %v320_v18 = vrot.slane %v319_v9, 2  ;;  %v351_v19 = vadd.f32 %v350_v11, %v349_v7  ;;  %v371_v20 = vsel %vm274_vm3, %v370_v15, 0.0 }
  0x72   : > { %v278_v21 = vrot.slane %v277_v12, 2  ;;  %v310_v22 = vrot.slane %v309_v13, 2  ;;  %v341_v23 = vadd.f32 %v340_v14, %v339_v10  ;;  %v372_v24 = vrot.slane %v371_v20, 4 }
  0x73   : > { %v289_v25 = vadd.f32 %v288_v17, %v287_v8  ;;  %v321_v26 = vadd.f32 %v320_v18, %v319_v9  ;;  %v352_v27 = vrot.slane %v351_v19, 2  ;;  %v381_v28 = vsel %vm274_vm3, %v269_v58, 0.0  ;;  %v337_v58 = vld [vmem:[#allocation2 + $0x2] sm:$0x1] }
  0x74   : > { %v279_v29 = vadd.f32 %v278_v21, %v277_v12  ;;  %v311_v30 = vadd.f32 %v310_v22, %v309_v13  ;;  %v342_v31 = vrot.slane %v341_v23, 2  ;;  %v373_v32 = vadd.f32 %v372_v24, %v371_v20  ;;  %v380_v12 = vld [vmem:[#allocation3 + $0x3] sm:$0x1] }
  0x75   : > { %v290_v16 = vrot.slane %v289_v25, 1  ;;  %v322_v33 = vrot.slane %v321_v26, 1  ;;  %v353_v34 = vadd.f32 %v352_v27, %v351_v19  ;;  %v382_v35 = vrot.slane %v381_v28, 4 }
  0x76   : > { %v280_v36 = vrot.slane %v279_v29, 1  ;;  %v312_v37 = vrot.slane %v311_v30, 1  ;;  %v343_v38 = vadd.f32 %v342_v31, %v341_v23  ;;  %v374_v39 = vrot.slane %v373_v32, 2 }
  0x77   : > { %v291_v41 = vadd.f32 %v290_v16, %v289_v25  ;;  %v323_v43 = vadd.f32 %v322_v33, %v321_v26  ;;  %v354_v44 = vrot.slane %v353_v34, 1  ;;  %v383_v45 = vadd.f32 %v382_v35, %v381_v28 }
  0x78   : > { %v281_v46 = vadd.f32 %v280_v36, %v279_v29  ;;  %v313_v48 = vadd.f32 %v312_v37, %v311_v30  ;;  %v344_v51 = vrot.slane %v343_v38, 1  ;;  %v375_v52 = vadd.f32 %v374_v39, %v373_v32 }
  0x79   : > { %v301_v54 = vadd.f32 %v958_v53, %v291_v41  ;;  %v333_v55 = vadd.f32 %v332_v56, %v323_v43  ;;  %v355_v60 = vadd.f32 %v354_v44, %v353_v34  ;;  %v384_v61 = vrot.slane %v383_v45, 2 }
  0x7a   : > { %v282_v62 = vadd.f32 %v281_v46, %v272_v40  ;;  %v314_v63 = vadd.f32 %v313_v48, %v305_v42  ;;  %v345_v0 = vadd.f32 %v344_v51, %v343_v38  ;;  %v376_v2 = vrot.slane %v375_v52, 1 }
  0x7b   : > { %v302_v3 = vadd.f32 %v301_v54, %v284_v47  ;;  %v334_v4 = vadd.f32 %v333_v55, %v316_v49  ;;  %v365_v5 = vadd.f32 %v960_v57, %v355_v60  ;;  %v385_v7 = vadd.f32 %v384_v61, %v383_v45 }
  0x7c   : > { %283 = vst [vmem:[#allocation2] sm:$0x1] %v282_v62  ;;  %315 = vst [vmem:[#allocation2 + $0x1] sm:$0x1] %v314_v63  ;;  %v346_v8 = vadd.f32 %v345_v0, %v337_v58  ;;  %v377_v9 = vadd.f32 %v376_v2, %v375_v52  ;;  %v396_v10 = vadd.f32 %v395_v59, %v956_v50 }
  0x7d   : > { %303 = vst [vmem:[#allocation3] sm:$0x1] %v302_v3  ;;  %335 = vst [vmem:[#allocation3 + $0x1] sm:$0x1] %v334_v4  ;;  %v366_v53 = vadd.f32 %v365_v5, %v348_v1  ;;  %v386_v56 = vrot.slane %v385_v7, 1 }
  0x7e   : > { %347 = vst [vmem:[#allocation2 + $0x2] sm:$0x1] %v346_v8  ;;  %v378_v11 = vadd.f32 %v377_v9, %v369_v6 }
  0x7f   : > { %367 = vst [vmem:[#allocation3 + $0x2] sm:$0x1] %v366_v53  ;;  %v387_v57 = vadd.f32 %v386_v56, %v385_v7 }
  0x80   : > { %379 = vst [vmem:[#allocation2 + $0x3] sm:$0x1] %v378_v11 }
  0x81   : > { %v397_v13 = vadd.f32 %v396_v10, %v387_v57 }
  0x83   : > { %v398_v14 = vadd.f32 %v397_v13, %v380_v12 }
  0x85   : > { %399 = vst [vmem:[#allocation3 + $0x3] sm:$0x1] %v398_v14 }
  0x87   : > { %v403_v15 = vld [vmem:[#allocation2] sm:$0xf] }
  0x88   : > { %404 = vst [vmem:[%s231_s21] sm:$0xf] %v403_v15 }
  0x8c   : > { %v405_v50 = vld [vmem:[#allocation3] sm:$0xf] }
  0x8d   : > { %559 = vst [vmem:[%s231_s21 + $0x4] sm:$0xf] %v405_v50 }
  0x8e   : > { %718 = shalt.err (!%p715_p7)
}
  0x8f   : > { %s719_s6 = scalar_lea.hbm %s992_s8, 128  ;;  %s723_s20 = scalar_lea.hbm %s1042_s2, 256 }
  0x90   : > { %p720_p1 = scmp.ne.s32.totalorder %s992_s8, %s719_s6  ;;  %p724_p3 = scmp.lt.s32.totalorder %s992_s8, %s1042_s2 }
  0x91   : > { %p725_p8 = scmp.lt.s32.totalorder %s723_s20, %s719_s6 }
  0x92   : > { %p721_p10 = pnand %p720_p1, %p865_p9 }
  0x93   : > { %p726_p0 = por %p725_p8, %p724_p3 }
  0x94   : > { %p722_p13 = pneg %p721_p10 }
  0x96   : > { %p727_p2 = pnand %p726_p0, %p722_p13 }
  0x98   : > { %730 = shalt.err (!%p727_p2)
}
  0x99   : > { %s797_s27 = smov 64   ;;  %s798_s21 = smov 4  }
  0x9a   : > { %571 = dma.vmem_to_hbm [thread:$0]  (%p865_p9), %s987_s28, 128, %s992_s8, %s409_s15, %s797_s27, %s797_s27, %s798_s21  }
  0x9b PF: > { %s439_s29 = sand.u32 1, %s769_s9   ;;  %p581_p5 = pnand %p542_p12, %p872_p11 }
  0x9c   : > { %s440_s3 = scalar_lea.sflag [#allocation6], %s439_s29 }
  0x9d   : > { %p582_p6 = pneg %p581_p5 }
  0x9f   : > { %764 = dma.done.wait (%p582_p6), %s440_s3, 128  }
  0xa0   : > { %766 = vsyncadd (%p582_p6), %s440_s3, 4294967168  ;;  %s21_s14 = sadd.s32 1, %s789_s14   ;;  %s1049_s9 = smov %s773_s10 }
  0xa1   : > { %p18_p4 = scmp.ge.s32.totalorder %s21_s14, 4   ;;  %s1050_s10 = smov %s777_s11 }
  0xa2   : > { %s1051_s11 = smov %s870_s23  ;;  %s1052_s12 = smov %s785_s13 }
  0xa3   : > { %s1053_s13 = smov %s1055_s17  ;;  %20 = sbr.rel (!%p18_p4) target bundleno = 8 (0x8), region = 98 }
  0xa8   :  { %445 = vsyncpa [#allocation5], 1 }
  0xa9   :  { %447 = vsyncpa [#allocation5 + $0x1], 1 }
  0xaa   :  { %448 = vsyncpa [#allocation8], 1 }
  0xab   :  { %450 = vsyncpa [#allocation8 + $0x1], 1 }
  0xac   :  { %451 = vsyncpa [#allocation6], 1 }
  0xad   :  { %453 = vsyncpa [#allocation6 + $0x1], 1 }

</bundles_post_ra>
